<compile_context>
chip_gen: v6e
topology: v6e:2x2x1
jax: 0.10.0
libtpu: 0.0.40
codegen_flags: <defaults>
</compile_context>

<pallas_src>
import functools

import jax
import jax.numpy as jnp
from jax.experimental import pallas as pl
from jax.experimental.pallas import tpu as pltpu

ALPHA = 2.0
GAMMA = 1.5          # handled exactly via z * sqrt(z)

LANE = 128           # TPU lane width (last dim of the 2D slab)
SUBLANE = 8          # sublane alignment for row tiles
MAX_TILE_ROWS = 2048 # 2048 * 128 * 4B = 1 MiB per input block (x2 inputs x2 bufs = 4 MiB VMEM)


def _round_up(x, m):
    return ((x + m - 1) // m) * m


def _focal_loss_kernel(x_ref, t_ref, o_ref, acc_ref, *,
                       total, inv_count, tile_rows, needs_mask):
    i = pl.program_id(0)

    @pl.when(i == 0)
    def _():
        acc_ref[...] = jnp.zeros_like(acc_ref)

    x = x_ref[...].astype(jnp.float32)
    t = t_ref[...].astype(jnp.float32)

    # Numerically-stable BCE with logits (matches torch's formulation).
    bce = jnp.maximum(x, 0.0) - x * t + jnp.log1p(jnp.exp(-jnp.abs(x)))
    pt = jnp.exp(-bce)

    # (1 - pt) ** 1.5  ==  z * sqrt(z), clamped for safety against pt > 1.
    z = jnp.maximum(1.0 - pt, 0.0)
    focal = (ALPHA * bce) * (z * jnp.sqrt(z))

    if needs_mask:
        # Zero the contribution of padded tail elements (flat index >= total).
        row = jax.lax.broadcasted_iota(jnp.int32, (tile_rows, LANE), 0)
        lane = jax.lax.broadcasted_iota(jnp.int32, (tile_rows, LANE), 1)
        flat = (i * tile_rows + row) * LANE + lane
        focal = jnp.where(flat < total, focal, 0.0)

    # vreg-shaped partial accumulation: pure VPU adds in the hot loop,
    # no per-step cross-lane (XLU) reduction and no serial scalar chain.
    partial = jnp.sum(focal.reshape(tile_rows // SUBLANE, SUBLANE, LANE), axis=0)
    acc_ref[...] += partial

    @pl.when(i == pl.num_programs(0) - 1)
    def _():
        # Single cross-lane/sublane reduce, once at the end.
        o_ref[...] = jnp.sum(acc_ref[...], keepdims=True) * jnp.float32(inv_count)


def focal_loss(inputs, targets):
    """Focal loss (alpha=2, gamma=1.5), mean-reduced, via a Pallas TPU kernel."""
    assert inputs.shape == targets.shape
    total = inputs.size

    x = jnp.ravel(inputs).astype(jnp.float32)
    t = jnp.ravel(targets).astype(jnp.float32)

    rows = -(-total // LANE)                                  # ceil-div
    tile_rows = min(MAX_TILE_ROWS, _round_up(rows, SUBLANE))  # sublane-aligned tile
    padded_rows = _round_up(rows, tile_rows)
    padded_total = padded_rows * LANE
    needs_mask = padded_total != total

    if needs_mask:
        pad = padded_total - total
        x = jnp.pad(x, (0, pad))
        t = jnp.pad(t, (0, pad))

    x2 = x.reshape(padded_rows, LANE)
    t2 = t.reshape(padded_rows, LANE)

    grid = (padded_rows // tile_rows,)

    kernel = functools.partial(
        _focal_loss_kernel,
        total=total,
        inv_count=1.0 / float(total),
        tile_rows=tile_rows,
        needs_mask=needs_mask,
    )

    out = pl.pallas_call(
        kernel,
        out_shape=jax.ShapeDtypeStruct((1, 1), jnp.float32),
        grid_spec=pltpu.PrefetchScalarGridSpec(
            num_scalar_prefetch=0,
            grid=grid,
            in_specs=[
                pl.BlockSpec((tile_rows, LANE), lambda i: (i, 0)),
                pl.BlockSpec((tile_rows, LANE), lambda i: (i, 0)),
            ],
            out_specs=pl.BlockSpec((1, 1), lambda i: (0, 0)),
            scratch_shapes=[pltpu.VMEM((SUBLANE, LANE), jnp.float32)],
        ),
        compiler_params=pltpu.CompilerParams(
            dimension_semantics=("arbitrary",),  # reduction axis: keep sequential
        ),
    )(x2, t2)

    return out[0, 0]


def focal_loss_ref(inputs, targets):
    x = inputs.astype(jnp.float32)
    t = targets.astype(jnp.float32)
    bce = jnp.maximum(x, 0.0) - x * t + jnp.log1p(jnp.exp(-jnp.abs(x)))
    pt = jnp.exp(-bce)
    return jnp.mean(ALPHA * (1.0 - pt) ** GAMMA * bce)


if __name__ == "__main__":
    key = jax.random.PRNGKey(0)
    k1, k2, k3, k4 = jax.random.split(key, 4)

    # Small NCHW-like logits/targets: batch=2, channels=4, spatial=16x16.
    shape = (2, 4, 16, 16)
    inputs = jax.random.normal(k1, shape, dtype=jnp.float32)
    targets = jax.random.bernoulli(k2, p=0.3, shape=shape).astype(jnp.float32)

    loss = focal_loss(inputs, targets)
    loss = jax.block_until_ready(loss)
    ref = focal_loss_ref(inputs, targets)
    assert jnp.allclose(loss, ref, rtol=1e-5, atol=1e-6), (loss, ref)

    # Odd-sized input: exercises the padded-and-masked tail path.
    shape2 = (2, 3, 7, 5)
    inputs2 = jax.random.normal(k3, shape2, dtype=jnp.float32)
    targets2 = jax.random.bernoulli(k4, p=0.3, shape=shape2).astype(jnp.float32)

    loss2 = focal_loss(inputs2, targets2)
    loss2 = jax.block_until_ready(loss2)
    ref2 = focal_loss_ref(inputs2, targets2)
    assert jnp.allclose(loss2, ref2, rtol=1e-5, atol=1e-6), (loss2, ref2)

    print("KERNEL_OK")
</pallas_src>

<mosaic_0001>
module attributes {stable_mosaic.version = 11 : i64} {
  func.func @_focal_loss_kernel(%arg0: i32, %arg1: memref<16x128xf32, #tpu.memory_space<vmem>>, %arg2: memref<16x128xf32, #tpu.memory_space<vmem>>, %arg3: memref<1x1xf32, #tpu.memory_space<vmem>>, %arg4: memref<8x128xf32, #tpu.memory_space<vmem>>) attributes {dimension_semantics = [#tpu.dimension_semantics<arbitrary>], iteration_bounds = array<i64: 1>, scalar_prefetch = 0 : i64, scratch_operands = 1 : i64, tpu.core_type = #tpu.core_type<tc>, window_params = [{transform_indices = @transform_0, window_bounds = array<i64: 16, 128>}, {transform_indices = @transform_1, window_bounds = array<i64: 16, 128>}, {pipeline_mode = #tpu.pipeline_mode<synchronous>, transform_indices = @transform_2, window_bounds = array<i64: 1, 1>}]} {
    %c0_i32 = arith.constant 0 : i32
    %0 = arith.cmpi eq, %arg0, %c0_i32 : i32
    %1 = arith.extui %0 : i1 to i32
    %c0_i32_0 = arith.constant 0 : i32
    %2 = arith.cmpi ne, %1, %c0_i32_0 : i32
    scf.if %2 {
      %cst_16 = arith.constant 0.000000e+00 : f32
      %35 = vector.broadcast %cst_16 : f32 to vector<8x128xf32>
      %c0_17 = arith.constant 0 : index
      %c0_18 = arith.constant 0 : index
      %36 = vector.load %arg4[%c0_17, %c0_18] : memref<8x128xf32, #tpu.memory_space<vmem>>, vector<8x128xf32>
      tpu.vector_store %arg4[%c0_17, %c0_18], %35 {strides = array<i32>} : memref<8x128xf32, #tpu.memory_space<vmem>>, vector<8x128xf32>,
    } else {
    }
    %c0 = arith.constant 0 : index
    %c0_1 = arith.constant 0 : index
    %3 = vector.load %arg1[%c0, %c0_1] : memref<16x128xf32, #tpu.memory_space<vmem>>, vector<16x128xf32>
    %c0_2 = arith.constant 0 : index
    %c0_3 = arith.constant 0 : index
    %4 = vector.load %arg2[%c0_2, %c0_3] : memref<16x128xf32, #tpu.memory_space<vmem>>, vector<16x128xf32>
    %cst = arith.constant 0.000000e+00 : f32
    %5 = vector.broadcast %cst : f32 to vector<16x128xf32>
    %6 = arith.maximumf %3, %5 : vector<16x128xf32>
    %7 = arith.mulf %3, %4 : vector<16x128xf32>
    %8 = arith.subf %6, %7 : vector<16x128xf32>
    %9 = math.absf %3 : vector<16x128xf32>
    %cst_4 = arith.constant 0.000000e+00 : f32
    %10 = vector.broadcast %cst_4 : f32 to vector<16x128xf32>
    %11 = arith.subf %10, %9 : vector<16x128xf32>
    %12 = math.exp %11 : vector<16x128xf32>
    %13 = math.log1p %12 : vector<16x128xf32>
    %14 = arith.addf %8, %13 : vector<16x128xf32>
    %cst_5 = arith.constant 0.000000e+00 : f32
    %15 = vector.broadcast %cst_5 : f32 to vector<16x128xf32>
    %16 = arith.subf %15, %14 : vector<16x128xf32>
    %17 = math.exp %16 : vector<16x128xf32>
    %cst_6 = arith.constant 1.000000e+00 : f32
    %18 = vector.broadcast %cst_6 : f32 to vector<16x128xf32>
    %19 = arith.subf %18, %17 : vector<16x128xf32>
    %cst_7 = arith.constant 0.000000e+00 : f32
    %20 = vector.broadcast %cst_7 : f32 to vector<16x128xf32>
    %21 = arith.maximumf %19, %20 : vector<16x128xf32>
    %cst_8 = arith.constant 2.000000e+00 : f32
    %22 = vector.broadcast %cst_8 : f32 to vector<16x128xf32>
    %23 = arith.mulf %22, %14 : vector<16x128xf32>
    %24 = math.sqrt %21 : vector<16x128xf32>
    %25 = arith.mulf %21, %24 : vector<16x128xf32>
    %26 = arith.mulf %23, %25 : vector<16x128xf32>
    %27 = vector.shape_cast %26 : vector<16x128xf32> to vector<2x8x128xf32>
    %cst_9 = arith.constant dense<0.000000e+00> : vector<8x128xf32>
    %28 = vector.multi_reduction <add>, %27, %cst_9 [0] : vector<2x8x128xf32> to vector<8x128xf32>
    %c0_10 = arith.constant 0 : index
    %c0_11 = arith.constant 0 : index
    %29 = vector.load %arg4[%c0_10, %c0_11] : memref<8x128xf32, #tpu.memory_space<vmem>>, vector<8x128xf32>
    %30 = arith.addf %29, %28 : vector<8x128xf32>
    %c0_12 = arith.constant 0 : index
    %c0_13 = arith.constant 0 : index
    %31 = vector.load %arg4[%c0_12, %c0_13] : memref<8x128xf32, #tpu.memory_space<vmem>>, vector<8x128xf32>
    tpu.vector_store %arg4[%c0_12, %c0_13], %30 {strides = array<i32>} : memref<8x128xf32, #tpu.memory_space<vmem>>, vector<8x128xf32>,
    %c0_i32_14 = arith.constant 0 : i32
    %32 = arith.cmpi eq, %arg0, %c0_i32_14 : i32
    %33 = arith.extui %32 : i1 to i32
    %c0_i32_15 = arith.constant 0 : i32
    %34 = arith.cmpi ne, %33, %c0_i32_15 : i32
    scf.if %34 {
      %c0_16 = arith.constant 0 : index
      %c0_17 = arith.constant 0 : index
      %35 = vector.load %arg4[%c0_16, %c0_17] : memref<8x128xf32, #tpu.memory_space<vmem>>, vector<8x128xf32>
      %36 = vector.shape_cast %35 : vector<8x128xf32> to vector<1x8x128xf32>
      %cst_18 = arith.constant dense<0.000000e+00> : vector<1xf32>
      %37 = vector.multi_reduction <add>, %36, %cst_18 [1, 2] : vector<1x8x128xf32> to vector<1xf32>
      %38 = vector.shape_cast %37 : vector<1xf32> to vector<1x1x1xf32>
      %39 = vector.extract %38[0, 0, 0] : f32 from vector<1x1x1xf32>
      %40 = vector.broadcast %39 : f32 to vector<1x1xf32>
      %cst_19 = arith.constant 4.8828125E-4 : f32
      %41 = vector.broadcast %cst_19 : f32 to vector<1x1xf32>
      %42 = arith.mulf %40, %41 : vector<1x1xf32>
      %c0_20 = arith.constant 0 : index
      %c0_21 = arith.constant 0 : index
      %43 = vector.load %arg3[%c0_20, %c0_21] : memref<1x1xf32, #tpu.memory_space<vmem>>, vector<1x1xf32>
      tpu.vector_store %arg3[%c0_20, %c0_21], %42 {strides = array<i32>} : memref<1x1xf32, #tpu.memory_space<vmem>>, vector<1x1xf32>,
    } else {
    }
    return
  }
  func.func @transform_0(%arg0: i32) -> (i32, i32) {
    %c0_i32 = arith.constant 0 : i32
    %c0_i32_0 = arith.constant 0 : i32
    return %arg0, %c0_i32 : i32, i32
  }
  func.func @transform_1(%arg0: i32) -> (i32, i32) {
    %c0_i32 = arith.constant 0 : i32
    %c0_i32_0 = arith.constant 0 : i32
    return %arg0, %c0_i32 : i32, i32
  }
  func.func @transform_2(%arg0: i32) -> (i32, i32) {
    %c0_i32 = arith.constant 0 : i32
    %c0_i32_0 = arith.constant 0 : i32
    %c0_i32_1 = arith.constant 0 : i32
    return %c0_i32, %c0_i32_0 : i32, i32
  }
}

</mosaic_0001>

<bundles_post_ra>
// kernel: tpu_custom_call.1
= control target key start
LH: loop header
LB: loop body
LE: loop exit
PB: predicated region body
PF: predicated region fallthrough
CT: control target
= control target key end

     0   :  { %7 = vsyncpa [#allocation4], 0  ;;  %s268_s0 = inlined_call_operand.hbm [shape: f32[16,128], index: 0, kind: input, shape index: {}]   ;;  %s269_s1 = inlined_call_operand.hbm [shape: f32[16,128], index: 1, kind: input, shape index: {}]   ;;  %s270_s2 = inlined_call_operand.hbm [shape: f32[1,1], index: 2, kind: output, shape index: {}]  }
   0x1   :  { %8 = vsyncpa [#allocation7], 0 }
   0x2   :  { %9 = vsyncpa [#allocation5], 0  ;;  %s239_s9 = smov [#allocation3]  }
   0x3   :  { %s15_s10 = sshll.u32 %s239_s9, 4  ;;  %s16_s10 = int_to_ptr.vmem [resolvable:$true] %s15_s10 }
   0x4   :  { %s181_s11 = scalar_lea.vmem %s16_s10, 256  ;;  %p186_p1 = scmp.lt.s32.totalorder %s16_s10, %s16_s10 }
   0x5   :  { %p182_p0 = scmp.ne.s32.totalorder %s16_s10, %s181_s11  ;;  %p187_p2 = scmp.lt.s32.totalorder %s181_s11, %s181_s11 }
   0x7   :  { %p188_p3 = por %p187_p2, %p186_p1 }
   0x9   :  { %p189_p4 = pnand %p188_p3, %p182_p0 }
   0xb   :  { %192 = shalt.err (!%p189_p4)
}
   0xc   :  { %s240_s12 = smov 128   ;;  %s241_s13 = smov 8  }
   0xd   :  { %21 = dma.hbm_to_vmem [thread:$0]  %s268_s0, 256, %s16_s10, [#allocation4], %s240_s12, %s240_s12, %s241_s13  }
   0xe   :  { %s242_s16 = smov [#allocation6]  }
   0xf   :  { %s27_s17 = sshll.u32 %s242_s16, 4  ;;  %s28_s17 = int_to_ptr.vmem [resolvable:$true] %s27_s17 }
  0x10   :  { %s201_s18 = scalar_lea.vmem %s28_s17, 256  ;;  %p206_p6 = scmp.lt.s32.totalorder %s28_s17, %s28_s17 }
  0x11   :  { %p202_p5 = scmp.ne.s32.totalorder %s28_s17, %s201_s18  ;;  %p207_p7 = scmp.lt.s32.totalorder %s201_s18, %s201_s18 }
  0x13   :  { %p208_p8 = por %p207_p7, %p206_p6 }
  0x15   :  { %p209_p9 = pnand %p208_p8, %p202_p5 }
  0x17   :  { %212 = shalt.err (!%p209_p9)
}
  0x18   :  { %33 = dma.hbm_to_vmem [thread:$0]  %s269_s1, 256, %s28_s17, [#allocation7], %s240_s12, %s240_s12, %s241_s13  }
  0x19   :  { %233 = dma.done.wait [#allocation4], 256  }
  0x1a   :  { %234 = vsyncadd [#allocation4], 4294967040 }
  0x1b   :  { %235 = dma.done.wait [#allocation7], 256  }
  0x1c   :  { %236 = vsyncadd [#allocation7], 4294967040  ;;  %v45_v0 = vld [vmem:[#allocation3] sm:$0xff]  ;;  %v46_v1 = vld [vmem:[#allocation3 + $0x8] sm:$0xff]  ;;  %s243_s0 = smov [#allocation8]   ;;  %vm132_vm6 = vcmask 0  }
  0x1d   :  { %v55_v2 = vand.u32 2147483647, %v45_v0  ;;  %v56_v3 = vand.u32 2147483647, %v46_v1  ;;  %v47_v14 = vld [vmem:[#allocation6] sm:$0xff]  ;;  %v48_v15 = vld [vmem:[#allocation6 + $0x8] sm:$0xff] }
  0x1e   :  { %v49_v17 = vmax.f32 %v45_v0, 0.0  ;;  %v51_v18 = vmul.f32 %v47_v14, %v45_v0  ;;  %v50_v21 = vmax.f32 %v46_v1, 0.0  ;;  %v52_v22 = vmul.f32 %v48_v15, %v46_v1  ;;  %s140_s1 = sshll.u32 %s243_s0, 4  ;;  %s141_s1 = int_to_ptr.vmem [resolvable:$true] %s140_s1 }
  0x1f   :  { %v57_v4 = vsub.f32 0.0, %v55_v2  ;;  %v58_v5 = vsub.f32 0.0, %v56_v3  ;;  %s213_s22 = scalar_lea.vmem %s141_s1, 16  ;;  %s217_s23 = scalar_lea.vmem %s141_s1, 32 }
  0x20   :  { %v53_v26 = vsub.f32 %v49_v17, %v51_v18  ;;  %v54_v29 = vsub.f32 %v50_v21, %v52_v22  ;;  %p214_p10 = scmp.ne.s32.totalorder %s141_s1, %s213_s22  ;;  %p218_p11 = scmp.lt.s32.totalorder %s141_s1, %s141_s1 }
  0x21   :  { %v59_v6 = vmul.f32 1.442695, %v57_v4  ;;  %v61_v7 = vmul.f32 1.442695, %v58_v5  ;;  %p219_p12 = scmp.lt.s32.totalorder %s217_s23, %s213_s22 }
  0x23   :  { %157 = vpow2.f32 %v59_v6  ;;  %p220_p13 = por %p219_p12, %p218_p11 }
  0x24   :  { %159 = vpow2.f32 %v61_v7 }
  0x25   :  { %p221_p0 = pnand %p220_p13, %p214_p10 }
  0x30   :  { %v158_v8 = vpop.eup %157 }
  0x31   :  { %v160_v9 = vpop.eup %159  ;;  %v63_v10 = vadd.f32 1.0, %v158_v8  ;;  %v66_v12 = vmul.f32 -0.5, %v158_v8  ;;  %v69_v19 = vand.u32 2147483647, %v158_v8 }
  0x32   :  { %v72_v11 = vadd.f32 1.0, %v160_v9  ;;  %v75_v13 = vmul.f32 -0.5, %v160_v9  ;;  %v78_v23 = vand.u32 2147483647, %v160_v9 }
  0x33   :  { %161 = vlog2.f32 %v63_v10  ;;  %v67_v16 = vadd.f32 1.0, %v66_v12  ;;  %vm70_vm0 = vcmp.lt.f32.partialorder %v69_v19, 0.0004427343 }
  0x34   :  { %163 = vlog2.f32 %v72_v11  ;;  %v76_v20 = vadd.f32 1.0, %v75_v13  ;;  %vm79_vm1 = vcmp.lt.f32.partialorder %v78_v23, 0.0004427343 }
  0x35   :  { %v68_v24 = vmul.f32 %v158_v8, %v67_v16 }
  0x36   :  { %v77_v27 = vmul.f32 %v160_v9, %v76_v20 }
  0x40   :  { %v162_v25 = vpop.eup %161 }
  0x41   :  { %v164_v28 = vpop.eup %163  ;;  %v65_v30 = vmul.f32 0.6931472, %v162_v25 }
  0x42   :  { %v74_v31 = vmul.f32 0.6931472, %v164_v28 }
  0x43   :  { %v71_v32 = vsel %vm70_vm0, %v68_v24, %v65_v30 }
  0x44   :  { %v80_v33 = vsel %vm79_vm1, %v77_v27, %v74_v31  ;;  %v81_v34 = vadd.f32 %v71_v32, %v53_v26 }
  0x45   :  { %v82_v35 = vadd.f32 %v80_v33, %v54_v29 }
  0x46   :  { %v83_v36 = vsub.f32 0.0, %v81_v34  ;;  %v93_v52 = vmul.f32 2.0, %v81_v34 }
  0x47   :  { %v84_v37 = vsub.f32 0.0, %v82_v35  ;;  %v94_v54 = vmul.f32 2.0, %v82_v35 }
  0x48   :  { %v85_v38 = vmul.f32 1.442695, %v83_v36 }
  0x49   :  { %v87_v39 = vmul.f32 1.442695, %v84_v37 }
  0x4a   :  { %165 = vpow2.f32 %v85_v38 }
  0x4b   :  { %167 = vpow2.f32 %v87_v39 }
  0x57   :  { %v166_v40 = vpop.eup %165 }
  0x58   :  { %v168_v41 = vpop.eup %167  ;;  %v89_v42 = vsub.f32 1.0, %v166_v40 }
  0x59   :  { %v90_v43 = vsub.f32 1.0, %v168_v41 }
  0x5a   :  { %v91_v44 = vmax.f32 %v89_v42, 0.0 }
  0x5b   :  { %v92_v45 = vmax.f32 %v90_v43, 0.0 }
  0x5c   :  { %169 = vrsqrt.f32 %v91_v44  ;;  %vm97_vm2 = vcmp.eq.f32.partialorder %v91_v44, inf  ;;  %v100_v47 = vand.u32 2147483648, %v91_v44  ;;  %vm99_vm3 = vcmp.eq.f32.partialorder %v91_v44, 0.0 }
  0x5d   :  { %171 = vrsqrt.f32 %v92_v45  ;;  %vm104_vm4 = vcmp.eq.f32.partialorder %v92_v45, inf  ;;  %v107_v50 = vand.u32 2147483648, %v92_v45  ;;  %vm106_vm5 = vcmp.eq.f32.partialorder %v92_v45, 0.0 }
  0x69   :  { %v170_v46 = vpop.eup %169 }
  0x6a   :  { %v172_v48 = vpop.eup %171  ;;  %v96_v49 = vmul.f32 %v170_v46, %v91_v44 }
  0x6b   :  { %v103_v51 = vmul.f32 %v172_v48, %v92_v45 }
  0x6c   :  { %v98_v53 = vsel %vm97_vm2, %v91_v44, %v96_v49 }
  0x6d   :  { %v101_v55 = vsel %vm99_vm3, %v100_v47, %v98_v53  ;;  %v105_v56 = vsel %vm104_vm4, %v92_v45, %v103_v51 }
  0x6e   :  { %v108_v57 = vsel %vm106_vm5, %v107_v50, %v105_v56  ;;  %v109_v58 = vmul.f32 %v101_v55, %v91_v44 }
  0x6f   :  { %v110_v59 = vmul.f32 %v108_v57, %v92_v45 }
  0x70   :  { %v111_v60 = vmul.f32 %v109_v58, %v93_v52 }
  0x71   :  { %v112_v61 = vmul.f32 %v110_v59, %v94_v54 }
  0x73   :  { %v113_v62 = vadd.f32 %v112_v61, %v111_v60 }
  0x75   :  { %121 = vadd.xlane.f32.xlu0 %v113_v62 }
  0xfe   :  { %v122_v63 = vpop.xlane.xlu0 %121 }
  0xff   :  { %v123_v0 = vrot.slane %v122_v63, 4 }
 0x101   :  { %v124_v1 = vadd.f32 %v123_v0, %v122_v63 }
 0x103   :  { %v125_v2 = vrot.slane %v124_v1, 2 }
 0x105   :  { %v126_v3 = vadd.f32 %v125_v2, %v124_v1 }
 0x107   :  { %v127_v4 = vrot.slane %v126_v3, 1 }
 0x109   :  { %v128_v5 = vadd.f32 %v127_v4, %v126_v3 }
 0x10b   :  { %150 = vpush %v128_v5 }
 0x13c   :  { %s151_s21 = spop %150 }
 0x13d   :  { %v130_v6 = vstv %s151_s21 }
 0x13e   :  { %v131_v7 = vmul.f32 0.00048828125, %v130_v6 }
 0x140   :  { %133 = vst.msk [vmem:[#allocation8] sm:$0x1] %vm132_vm6, %v131_v7 }
 0x141   :  { %224 = shalt.err (!%p221_p0)
}
 0x142   :  { %143 = dma.vmem_to_hbm [thread:$0]  %s141_s1, 16, %s270_s2, [#allocation5]  }
 0x143   :  { %237 = dma.done.wait [#allocation5], 16  }
 0x144   :  { %238 = vsyncadd [#allocation5], 4294967280 }
 0x145   :  { %147 = vsyncpa [#allocation4], 1 }
 0x146   :  { %148 = vsyncpa [#allocation7], 1 }
 0x147   :  { %149 = vsyncpa [#allocation5], 1 }

</bundles_post_ra>
